<compile_context>
chip_gen: v5e
topology: v5e:2x2
jax: 0.10.0
libtpu: 0.0.40
codegen_flags: <defaults>
</compile_context>

<pallas_src>
import math
import functools

import jax
import jax.numpy as jnp
from jax.experimental import pallas as pl
from jax.experimental.pallas import tpu as pltpu


# ---------------------------------------------------------------------------
# Parameter / buffer setup (plain JAX glue): deterministic sinusoidal table.
# ---------------------------------------------------------------------------
def make_positional_encoding(d_model: int, max_len: int = 5000) -> jnp.ndarray:
    position = jnp.arange(max_len, dtype=jnp.float32)[:, None]                      # [max_len, 1]
    div_term = jnp.exp(
        jnp.arange(0, d_model, 2, dtype=jnp.float32) * (-math.log(10000.0) / d_model)
    )                                                                                # [d_model//2]
    pe = jnp.zeros((max_len, 1, d_model), dtype=jnp.float32)
    pe = pe.at[:, 0, 0::2].set(jnp.sin(position * div_term))
    pe = pe.at[:, 0, 1::2].set(jnp.cos(position * div_term))
    return pe                                                                        # [max_len, 1, d_model]


# ---------------------------------------------------------------------------
# Pallas kernels: elementwise hot path  out = dropout(x + pe)
#   x_ref / o_ref blocks: (TS, batch*d_model)   (lane-dense 2-D layout)
#   pe_ref block        : (TS, d_model)         (broadcast over batch in-kernel)
# ---------------------------------------------------------------------------
def _pe_add_kernel(x_ref, pe_ref, o_ref, *, batch: int):
    val = x_ref[...] + jnp.tile(pe_ref[...], (1, batch))
    o_ref[...] = val.astype(o_ref.dtype)


def _pe_add_dropout_kernel(x_ref, pe_ref, bits_ref, o_ref, *, batch: int, p: float):
    val = x_ref[...] + jnp.tile(pe_ref[...], (1, batch))
    # Integer-domain keep decision: P(bits >= thresh) = 1 - p  (no float conversion).
    thresh = jnp.uint32(min(int(round(p * (1 << 32))), (1 << 32) - 1))
    keep = bits_ref[...] >= thresh
    scale = jnp.asarray(1.0 / (1.0 - p), dtype=val.dtype)
    val = jnp.where(keep, val * scale, jnp.zeros_like(val))
    o_ref[...] = val.astype(o_ref.dtype)


def _choose_seq_tile(seq_len: int, row_bytes: int, target_bytes: int = 4 * 1024 * 1024) -> int:
    """Pick a seq-tile size giving ~4 MiB blocks (v7x-safe), multiple of 8 when partial."""
    rows = max(1, target_bytes // max(row_bytes, 1))
    if rows >= seq_len:
        return seq_len                      # full axis -> always legal
    return max(8, (rows // 8) * 8)          # second-to-minor dim must be a multiple of 8


# ---------------------------------------------------------------------------
# Wrapper
# ---------------------------------------------------------------------------
def positional_encoding_forward(
    x: jnp.ndarray,
    pe: jnp.ndarray,
    *,
    dropout_p: float = 0.1,
    training: bool = True,
    rng_key=None,
) -> jnp.ndarray:
    """x: [seq_len, batch, d_model];  pe: [max_len, 1, d_model]."""
    assert 0.0 <= dropout_p < 1.0, "dropout_p must be in [0, 1)"
    seq_len, batch, d_model = x.shape
    width = batch * d_model

    # Lane-dense 2-D views; pe pre-cast to x dtype (bf16-safe path).
    x2 = x.reshape(seq_len, width)
    pe2 = pe[:seq_len, 0, :].astype(x.dtype)            # [seq_len, d_model]

    row_bytes = width * jnp.dtype(x.dtype).itemsize
    ts = _choose_seq_tile(seq_len, row_bytes)
    grid = (pl.cdiv(seq_len, ts),)

    x_spec = pl.BlockSpec((ts, width), lambda i: (i, 0))
    pe_spec = pl.BlockSpec((ts, d_model), lambda i: (i, 0))
    out_spec = pl.BlockSpec((ts, width), lambda i: (i, 0))

    compiler_params = pltpu.CompilerParams(
        dimension_semantics=("parallel",),               # seq tiles independent (uses both v7x TCs)
        vmem_limit_bytes=48 * 1024 * 1024,               # headroom under v7x's 64 MiB VMEM
    )

    apply_dropout = bool(training) and dropout_p > 0.0
    if apply_dropout:
        if rng_key is None:
            rng_key = jax.random.PRNGKey(0)
        # Tiling-invariant randomness: bits drawn once over the full array.
        bits = jax.random.bits(rng_key, (seq_len, width), dtype=jnp.uint32)
        kernel = functools.partial(_pe_add_dropout_kernel, batch=batch, p=float(dropout_p))
        out2 = pl.pallas_call(
            kernel,
            out_shape=jax.ShapeDtypeStruct((seq_len, width), x.dtype),
            grid=grid,
            in_specs=[x_spec, pe_spec, pl.BlockSpec((ts, width), lambda i: (i, 0))],
            out_specs=out_spec,
            compiler_params=compiler_params,
        )(x2, pe2, bits)
    else:
        kernel = functools.partial(_pe_add_kernel, batch=batch)
        out2 = pl.pallas_call(
            kernel,
            out_shape=jax.ShapeDtypeStruct((seq_len, width), x.dtype),
            grid=grid,
            in_specs=[x_spec, pe_spec],
            out_specs=out_spec,
            compiler_params=compiler_params,
        )(x2, pe2)

    return out2.reshape(seq_len, batch, d_model)


if __name__ == "__main__":
    SEQ, BATCH, D_MODEL = 8, 2, 32
    MAX_LEN = 64

    key = jax.random.PRNGKey(0)
    kx, kd = jax.random.split(key)
    x = jax.random.normal(kx, (SEQ, BATCH, D_MODEL), dtype=jnp.float32)
    pe = make_positional_encoding(D_MODEL, MAX_LEN)

    # Eval-mode pass (deterministic) — check against pure-JAX reference.
    out_eval = positional_encoding_forward(x, pe, dropout_p=0.1, training=False)
    out_eval = jax.block_until_ready(out_eval)
    ref_eval = x + pe[:SEQ]
    assert jnp.allclose(out_eval, ref_eval, atol=1e-6), "eval-mode mismatch"

    # Training-mode pass (inverted dropout with streamed random bits).
    out_train = positional_encoding_forward(
        x, pe, dropout_p=0.1, training=True, rng_key=kd
    )
    out_train = jax.block_until_ready(out_train)
    assert out_train.shape == x.shape and out_train.dtype == x.dtype
    # Every element is either dropped (0) or equal to (x+pe)/(1-p).
    scaled = ref_eval / (1.0 - 0.1)
    ok = jnp.all((out_train == 0.0) | (jnp.abs(out_train - scaled) < 1e-5))
    assert bool(ok), "dropout semantics mismatch"

    print("KERNEL_OK")
</pallas_src>

<mosaic_0001>
module attributes {stable_mosaic.version = 11 : i64} {
  func.func @_pe_add_kernel(%arg0: i32, %arg1: memref<8x64xf32, #tpu.memory_space<vmem>>, %arg2: memref<8x32xf32, #tpu.memory_space<vmem>>, %arg3: memref<8x64xf32, #tpu.memory_space<vmem>>) attributes {dimension_semantics = [#tpu.dimension_semantics<parallel>], iteration_bounds = array<i64: 1>, scalar_prefetch = 0 : i64, scratch_operands = 0 : i64, tpu.core_type = #tpu.core_type<tc>, window_params = [{transform_indices = @transform_0, window_bounds = array<i64: 8, 64>}, {transform_indices = @transform_1, window_bounds = array<i64: 8, 32>}, {transform_indices = @transform_2, window_bounds = array<i64: 8, 64>}]} {
    %c0 = arith.constant 0 : index
    %c0_0 = arith.constant 0 : index
    %0 = vector.load %arg1[%c0, %c0_0] : memref<8x64xf32, #tpu.memory_space<vmem>>, vector<8x64xf32>
    %c0_1 = arith.constant 0 : index
    %c0_2 = arith.constant 0 : index
    %1 = vector.load %arg2[%c0_1, %c0_2] : memref<8x32xf32, #tpu.memory_space<vmem>>, vector<8x32xf32>
    %2 = tpu.concatenate %1, %1 in 1 : vector<8x32xf32>, vector<8x32xf32> -> vector<8x64xf32>
    %3 = arith.addf %0, %2 : vector<8x64xf32>
    %c0_3 = arith.constant 0 : index
    %c0_4 = arith.constant 0 : index
    %4 = vector.load %arg3[%c0_3, %c0_4] : memref<8x64xf32, #tpu.memory_space<vmem>>, vector<8x64xf32>
    tpu.vector_store %arg3[%c0_3, %c0_4], %3 {strides = array<i32>} : memref<8x64xf32, #tpu.memory_space<vmem>>, vector<8x64xf32>,
    return
  }
  func.func @transform_0(%arg0: i32) -> (i32, i32) {
    %c0_i32 = arith.constant 0 : i32
    %c0_i32_0 = arith.constant 0 : i32
    return %arg0, %c0_i32 : i32, i32
  }
  func.func @transform_1(%arg0: i32) -> (i32, i32) {
    %c0_i32 = arith.constant 0 : i32
    %c0_i32_0 = arith.constant 0 : i32
    return %arg0, %c0_i32 : i32, i32
  }
  func.func @transform_2(%arg0: i32) -> (i32, i32) {
    %c0_i32 = arith.constant 0 : i32
    %c0_i32_0 = arith.constant 0 : i32
    return %arg0, %c0_i32 : i32, i32
  }
}

</mosaic_0001>

<bundles_post_ra>
// kernel: tpu_custom_call.1
= control target key start
LH: loop header
LB: loop body
LE: loop exit
PB: predicated region body
PF: predicated region fallthrough
CT: control target
= control target key end

     0   :  { %7 = vsyncpa [#allocation3], 0  ;;  %s179_s0 = inlined_call_operand.hbm [shape: f32[8,64], index: 0, kind: input, shape index: {}]   ;;  %s180_s1 = inlined_call_operand.hbm [shape: f32[8,32], index: 1, kind: input, shape index: {}]   ;;  %s181_s2 = inlined_call_operand.hbm [shape: f32[8,64], index: 2, kind: output, shape index: {}]  }
   0x1   :  { %8 = vsyncpa [#allocation6], 0 }
   0x2   :  { %9 = vsyncpa [#allocation4], 0  ;;  %s15_s11 = sshll.u32 %s179_s0, 4  ;;  %s151_s12 = smov [#allocation2]   ;;  %s16_s11 = int_to_ptr.hbm [resolvable:$true] %s15_s11 }
   0x3   :  { %s17_s13 = sshll.u32 %s151_s12, 4  ;;  %s26_s16 = sshll.u32 %s180_s1, 4  ;;  %s18_s13 = int_to_ptr.vmem [resolvable:$true] %s17_s13  ;;  %s27_s16 = int_to_ptr.hbm [resolvable:$true] %s26_s16 }
   0x4   :  { %20 = dma.hbm_to_vmem [thread:$0]  %s16_s11, 128, %s18_s13, [#allocation3]  }
   0x5   :  { %s152_s17 = smov [#allocation5]  }
   0x6   :  { %s28_s18 = sshll.u32 %s152_s17, 4  ;;  %s29_s18 = int_to_ptr.vmem [resolvable:$true] %s28_s18 }
   0x7   :  { %31 = dma.hbm_to_vmem [thread:$0]  %s27_s16, 128, %s29_s18, [#allocation6]  }
   0x8   :  { %145 = dma.done.wait [#allocation3], 128  }
   0x9   :  { %146 = vsyncadd [#allocation3], 4294967168 }
   0xa   :  { %147 = dma.done.wait [#allocation6], 128  }
   0xb   :  { %148 = vsyncadd [#allocation6], 4294967168  ;;  %v41_v0 = vld [vmem:[#allocation5] sm:$0xff]  ;;  %s153_s0 = smov 32   ;;  %vm46_vm0 = vcmask 261120   ;;  %v40_v1 = vld [vmem:[#allocation2] sm:$0xff] }
   0xc   :  { %43 = vrot.lane.b32.xlu0 %v41_v0, %s153_s0  ;;  %s154_s19 = smov [#allocation7]   ;;  %s58_s1 = sshll.u32 %s181_s2, 4  ;;  %vm49_vm1 = vcmask 523264   ;;  %s59_s1 = int_to_ptr.hbm [resolvable:$true] %s58_s1 }
   0xd   :  { %s56_s20 = sshll.u32 %s154_s19, 4  ;;  %s57_s20 = int_to_ptr.vmem [resolvable:$true] %s56_s20 }
  0x7e   :  { %v44_v2 = vpop.permute.xlu0 %43 }
  0x7f   :  { %v47_v3 = vsel %vm46_vm0, %v41_v0, %v44_v2 }
  0x80   :  { %v48_v4 = vadd.f32 %v47_v3, %v40_v1 }
  0x82   :  { %50 = vst.msk [vmem:[#allocation7] sm:$0xff] %vm49_vm1, %v48_v4 }
  0x83   :  { %61 = dma.vmem_to_hbm [thread:$0]  %s57_s20, 128, %s59_s1, [#allocation4]  }
  0x84   :  { %149 = dma.done.wait [#allocation4], 128  }
  0x85   :  { %150 = vsyncadd [#allocation4], 4294967168 }
  0x86   :  { %66 = vsyncpa [#allocation3], 1 }
  0x87   :  { %67 = vsyncpa [#allocation6], 1 }
  0x88   :  { %68 = vsyncpa [#allocation4], 1 }

</bundles_post_ra>
